<compile_context>
chip_gen: v7x
topology: tpu7x:2x2x1
jax: 0.10.0
libtpu: 0.0.40
codegen_flags: <defaults>
</compile_context>

<pallas_src>
import jax
import jax.numpy as jnp
from jax.experimental import pallas as pl
from jax.experimental.pallas import tpu as pltpu

HIDDEN = 128      # affine1 out features
IN_DIM = 4        # observation dim (CartPole state)
LANE = 128        # TPU lane width
DEF_TILE_B = 512  # batch rows per grid step


def policy_kernel(xt_ref, wp_ref, bd_ref, o_ref):
    """xt_ref: (IN_DIM, TB) observations, batch on lanes.
       wp_ref: (HIDDEN, 6) packed [w1 | b1 | (w2[1]-w2[0])].
       bd_ref: (1, 1) SMEM scalar  b2[1]-b2[0].
       o_ref : (2, TB) softmax probabilities, batch on lanes."""
    xt = xt_ref[...]                        # (4, TB)
    wp = wp_ref[...]                        # (128, 6)

    # ---- affine1 + ReLU on the VPU: 4 broadcast FMAs instead of a K=4 matmul
    acc = wp[:, 0:1] * xt[0:1, :]           # (128,1)*(1,TB) -> (128,TB)
    for i in range(1, IN_DIM):
        acc = acc + wp[:, i:i + 1] * xt[i:i + 1, :]
    h = jnp.maximum(acc + wp[:, 4:5], 0.0)  # + b1, ReLU

    # ---- affine2 + softmax(dim=1) == stable 2-class sigmoid of the logit diff
    z = jnp.sum(h * wp[:, 5:6], axis=0, keepdims=True) + bd_ref[0, 0]  # (1, TB)
    e = jnp.exp(-jnp.abs(z))                # in (0, 1]; never overflows
    inv = 1.0 / (1.0 + e)
    p_hi = inv                              # prob of the arg-max class
    p_lo = e * inv
    pos = z >= 0.0
    o_ref[0:1, :] = jnp.where(pos, p_lo, p_hi)   # P(action 0)
    o_ref[1:2, :] = jnp.where(pos, p_hi, p_lo)   # P(action 1)


def _round_up(a, m):
    return -(-a // m) * m


def policy_forward(x, w1, b1, w2, b2, *, tile_b=DEF_TILE_B):
    """x: (B, 4) float32 -> (B, 2) softmax probabilities.
    Params use PyTorch nn.Linear layout: w1 (128,4), b1 (128,), w2 (2,128), b2 (2,)."""
    B = x.shape[0]

    # Pack all vector params into a single VMEM tile; scalar bias diff -> SMEM.
    w_params = jnp.concatenate(
        [w1.astype(jnp.float32),
         b1.reshape(HIDDEN, 1).astype(jnp.float32),
         (w2[1] - w2[0]).reshape(HIDDEN, 1).astype(jnp.float32)],
        axis=1)                                               # (128, 6)
    b_diff = (b2[1] - b2[0]).reshape(1, 1).astype(jnp.float32)

    # Pad batch to a lane-aligned tile and move it onto the lane axis.
    b_pad = max(LANE, _round_up(B, LANE))
    if b_pad > tile_b:
        tb = tile_b
        b_pad = _round_up(B, tb)
    else:
        tb = b_pad
    x_t = jnp.pad(x.astype(jnp.float32), ((0, b_pad - B), (0, 0))).T  # (4, b_pad)

    out_t = pl.pallas_call(
        policy_kernel,
        out_shape=jax.ShapeDtypeStruct((2, b_pad), jnp.float32),
        grid=(b_pad // tb,),
        in_specs=[
            pl.BlockSpec((IN_DIM, tb), lambda i: (0, i)),       # x tile (streams)
            pl.BlockSpec((HIDDEN, 6), lambda i: (0, 0)),        # params, VMEM-resident
            pl.BlockSpec(memory_space=pltpu.MemorySpace.SMEM),  # scalar bias diff
        ],
        out_specs=pl.BlockSpec((2, tb), lambda i: (0, i)),      # lane-dense output
        compiler_params=pltpu.CompilerParams(
            dimension_semantics=("parallel",)),
    )(x_t, w_params, b_diff)

    return out_t.T[:B]                                          # back to (B, 2)


def init_params(key):
    """nn.Linear-style init: U(-1/sqrt(fan_in), +1/sqrt(fan_in)), PyTorch shapes."""
    k1, k2, k3, k4 = jax.random.split(key, 4)
    bound1 = 1.0 / jnp.sqrt(jnp.float32(IN_DIM))
    bound2 = 1.0 / jnp.sqrt(jnp.float32(HIDDEN))
    w1 = jax.random.uniform(k1, (HIDDEN, IN_DIM), jnp.float32, -bound1, bound1)
    b1 = jax.random.uniform(k2, (HIDDEN,), jnp.float32, -bound1, bound1)
    w2 = jax.random.uniform(k3, (2, HIDDEN), jnp.float32, -bound2, bound2)
    b2 = jax.random.uniform(k4, (2,), jnp.float32, -bound2, bound2)
    return w1, b1, w2, b2


def policy_ref(x, w1, b1, w2, b2):
    hp = jax.lax.Precision.HIGHEST
    h = jnp.maximum(jnp.dot(x, w1.T, precision=hp) + b1, 0.0)
    s = jnp.dot(h, w2.T, precision=hp) + b2
    return jax.nn.softmax(s, axis=1)


# TODO(synk): saved_log_probs / rewards buffers and Categorical sampling belong to
# the host-side RL training loop, not the forward pass, so they are not kernelized.

if __name__ == "__main__":
    key = jax.random.PRNGKey(0)
    kx, kp, kx2 = jax.random.split(key, 3)
    w1, b1, w2, b2 = init_params(kp)

    # Small CartPole-like batch (state dim = 4).
    batch = 8
    x = jax.random.normal(kx, (batch, IN_DIM), jnp.float32)
    out = jax.block_until_ready(policy_forward(x, w1, b1, w2, b2))
    ref = policy_ref(x, w1, b1, w2, b2)
    assert out.shape == (batch, 2)
    assert jnp.allclose(jnp.sum(out, axis=1), 1.0, atol=1e-5)
    assert jnp.allclose(out, ref, atol=1e-5, rtol=1e-5)

    # Rollout-sized batch: exercises padding + multi-tile "parallel" grid.
    batch2 = 1000
    x2 = jax.random.normal(kx2, (batch2, IN_DIM), jnp.float32)
    out2 = jax.block_until_ready(policy_forward(x2, w1, b1, w2, b2))
    ref2 = policy_ref(x2, w1, b1, w2, b2)
    assert out2.shape == (batch2, 2)
    assert jnp.allclose(jnp.sum(out2, axis=1), 1.0, atol=1e-5)
    assert jnp.allclose(out2, ref2, atol=1e-5, rtol=1e-5)

    print("KERNEL_OK")
</pallas_src>

<mosaic_0001>
module attributes {stable_mosaic.version = 11 : i64} {
  func.func @policy_kernel(%arg0: i32, %arg1: memref<4x128xf32, #tpu.memory_space<vmem>>, %arg2: memref<128x6xf32, #tpu.memory_space<vmem>>, %arg3: memref<1x1xf32, #tpu.memory_space<smem>>, %arg4: memref<2x128xf32, #tpu.memory_space<vmem>>) attributes {dimension_semantics = [#tpu.dimension_semantics<parallel>], iteration_bounds = array<i64: 1>, scalar_prefetch = 0 : i64, scratch_operands = 0 : i64, tpu.core_type = #tpu.core_type<tc>, window_params = [{transform_indices = @transform_0, window_bounds = array<i64: 4, 128>}, {pipeline_mode = #tpu.pipeline_mode<synchronous>, transform_indices = @transform_1, window_bounds = array<i64: 128, 6>}, {transform_indices = @transform_2, window_bounds = array<i64: 1, 1>}, {transform_indices = @transform_3, window_bounds = array<i64: 2, 128>}]} {
    %c0 = arith.constant 0 : index
    %c0_0 = arith.constant 0 : index
    %0 = vector.load %arg1[%c0, %c0_0] : memref<4x128xf32, #tpu.memory_space<vmem>>, vector<4x128xf32>
    %c0_1 = arith.constant 0 : index
    %c0_2 = arith.constant 0 : index
    %1 = vector.load %arg2[%c0_1, %c0_2] : memref<128x6xf32, #tpu.memory_space<vmem>>, vector<128x6xf32>
    %2 = vector.extract_strided_slice %1 {offsets = [0, 0], sizes = [128, 1], strides = [1, 1]} : vector<128x6xf32> to vector<128x1xf32>
    %3 = vector.extract_strided_slice %0 {offsets = [0, 0], sizes = [1, 128], strides = [1, 1]} : vector<4x128xf32> to vector<1x128xf32>
    %4 = vector.broadcast %2 : vector<128x1xf32> to vector<128x128xf32>
    %5 = vector.broadcast %3 : vector<1x128xf32> to vector<128x128xf32>
    %6 = arith.mulf %4, %5 : vector<128x128xf32>
    %7 = vector.extract_strided_slice %1 {offsets = [0, 1], sizes = [128, 1], strides = [1, 1]} : vector<128x6xf32> to vector<128x1xf32>
    %8 = vector.extract_strided_slice %0 {offsets = [1, 0], sizes = [1, 128], strides = [1, 1]} : vector<4x128xf32> to vector<1x128xf32>
    %9 = vector.broadcast %7 : vector<128x1xf32> to vector<128x128xf32>
    %10 = vector.broadcast %8 : vector<1x128xf32> to vector<128x128xf32>
    %11 = arith.mulf %9, %10 : vector<128x128xf32>
    %12 = arith.addf %6, %11 : vector<128x128xf32>
    %13 = vector.extract_strided_slice %1 {offsets = [0, 2], sizes = [128, 1], strides = [1, 1]} : vector<128x6xf32> to vector<128x1xf32>
    %14 = vector.extract_strided_slice %0 {offsets = [2, 0], sizes = [1, 128], strides = [1, 1]} : vector<4x128xf32> to vector<1x128xf32>
    %15 = vector.broadcast %13 : vector<128x1xf32> to vector<128x128xf32>
    %16 = vector.broadcast %14 : vector<1x128xf32> to vector<128x128xf32>
    %17 = arith.mulf %15, %16 : vector<128x128xf32>
    %18 = arith.addf %12, %17 : vector<128x128xf32>
    %19 = vector.extract_strided_slice %1 {offsets = [0, 3], sizes = [128, 1], strides = [1, 1]} : vector<128x6xf32> to vector<128x1xf32>
    %20 = vector.extract_strided_slice %0 {offsets = [3, 0], sizes = [1, 128], strides = [1, 1]} : vector<4x128xf32> to vector<1x128xf32>
    %21 = vector.broadcast %19 : vector<128x1xf32> to vector<128x128xf32>
    %22 = vector.broadcast %20 : vector<1x128xf32> to vector<128x128xf32>
    %23 = arith.mulf %21, %22 : vector<128x128xf32>
    %24 = arith.addf %18, %23 : vector<128x128xf32>
    %25 = vector.extract_strided_slice %1 {offsets = [0, 4], sizes = [128, 1], strides = [1, 1]} : vector<128x6xf32> to vector<128x1xf32>
    %26 = vector.broadcast %25 : vector<128x1xf32> to vector<128x128xf32>
    %27 = arith.addf %24, %26 : vector<128x128xf32>
    %cst = arith.constant 0.000000e+00 : f32
    %28 = vector.broadcast %cst : f32 to vector<128x128xf32>
    %29 = arith.maximumf %27, %28 : vector<128x128xf32>
    %30 = vector.extract_strided_slice %1 {offsets = [0, 5], sizes = [128, 1], strides = [1, 1]} : vector<128x6xf32> to vector<128x1xf32>
    %31 = vector.broadcast %30 : vector<128x1xf32> to vector<128x128xf32>
    %32 = arith.mulf %29, %31 : vector<128x128xf32>
    %cst_3 = arith.constant dense<0.000000e+00> : vector<128xf32>
    %33 = vector.multi_reduction <add>, %32, %cst_3 [0] : vector<128x128xf32> to vector<128xf32>
    %34 = vector.shape_cast %33 : vector<128xf32> to vector<1x128xf32>
    %c0_4 = arith.constant 0 : index
    %c0_5 = arith.constant 0 : index
    %35 = memref.load %arg3[%c0_4, %c0_5] : memref<1x1xf32, #tpu.memory_space<smem>>
    %36 = vector.broadcast %35 : f32 to vector<1x128xf32>
    %37 = arith.addf %34, %36 : vector<1x128xf32>
    %38 = math.absf %37 : vector<1x128xf32>
    %cst_6 = arith.constant 0.000000e+00 : f32
    %39 = vector.broadcast %cst_6 : f32 to vector<1x128xf32>
    %40 = arith.subf %39, %38 : vector<1x128xf32>
    %41 = math.exp %40 : vector<1x128xf32>
    %cst_7 = arith.constant 1.000000e+00 : f32
    %42 = vector.broadcast %cst_7 : f32 to vector<1x128xf32>
    %43 = arith.addf %42, %41 : vector<1x128xf32>
    %cst_8 = arith.constant 1.000000e+00 : f32
    %44 = vector.broadcast %cst_8 : f32 to vector<1x128xf32>
    %45 = arith.divf %44, %43 : vector<1x128xf32>
    %46 = arith.mulf %41, %45 : vector<1x128xf32>
    %cst_9 = arith.constant 0.000000e+00 : f32
    %47 = vector.broadcast %cst_9 : f32 to vector<1x128xf32>
    %48 = arith.cmpf oge, %37, %47 : vector<1x128xf32>
    %49 = arith.select %48, %46, %45 : vector<1x128xi1>, vector<1x128xf32>
    %c0_10 = arith.constant 0 : index
    %c0_11 = arith.constant 0 : index
    %50 = vector.load %arg4[%c0_10, %c0_11] : memref<2x128xf32, #tpu.memory_space<vmem>>, vector<1x128xf32>
    tpu.vector_store %arg4[%c0_10, %c0_11], %49 {strides = array<i32>} : memref<2x128xf32, #tpu.memory_space<vmem>>, vector<1x128xf32>,
    %51 = arith.select %48, %45, %46 : vector<1x128xi1>, vector<1x128xf32>
    %c1 = arith.constant 1 : index
    %c0_12 = arith.constant 0 : index
    %52 = vector.load %arg4[%c1, %c0_12] : memref<2x128xf32, #tpu.memory_space<vmem>>, vector<1x128xf32>
    tpu.vector_store %arg4[%c1, %c0_12], %51 {strides = array<i32>} : memref<2x128xf32, #tpu.memory_space<vmem>>, vector<1x128xf32>,
    return
  }
  func.func @transform_0(%arg0: i32) -> (i32, i32) {
    %c0_i32 = arith.constant 0 : i32
    %c0_i32_0 = arith.constant 0 : i32
    return %c0_i32, %arg0 : i32, i32
  }
  func.func @transform_1(%arg0: i32) -> (i32, i32) {
    %c0_i32 = arith.constant 0 : i32
    %c0_i32_0 = arith.constant 0 : i32
    %c0_i32_1 = arith.constant 0 : i32
    return %c0_i32, %c0_i32_0 : i32, i32
  }
  func.func @transform_2(%arg0: i32) -> (i32, i32) {
    %c0_i32 = arith.constant 0 : i32
    %c0_i32_0 = arith.constant 0 : i32
    %c0_i32_1 = arith.constant 0 : i32
    return %c0_i32, %c0_i32_0 : i32, i32
  }
  func.func @transform_3(%arg0: i32) -> (i32, i32) {
    %c0_i32 = arith.constant 0 : i32
    %c0_i32_0 = arith.constant 0 : i32
    return %c0_i32, %arg0 : i32, i32
  }
}

</mosaic_0001>

<bundles_post_ra>
// kernel: tpu_custom_call.1
= control target key start
LH: loop header
LB: loop body
LE: loop exit
PB: predicated region body
PF: predicated region fallthrough
CT: control target
= control target key end

     0   :  { %v723_v2 = vmov 0   ;;  %s1170_s0 = inlined_call_operand.vmem [shape: f32[4,128], index: 0, kind: input, shape index: {}]   ;;  %s1171_s1 = inlined_call_operand.vmem [shape: f32[128,6], index: 1, kind: input, shape index: {}]   ;;  %s1172_s2 = inlined_call_operand.<no memory space> [shape: f32[1,1], index: 2, kind: input, shape index: {}]   ;;  %s1173_s3 = inlined_call_operand.hbm [shape: f32[2,128], index: 3, kind: output, shape index: {}]  }
   0x1   :  { %v753_v0 = vld [vmem:[%s1171_s1 + $0x10] sm:$0xff]  ;;  %v758_v1 = vld [vmem:[%s1171_s1] sm:$0xff]  ;;  %668 = vset.pattern.permute.xlu1 %v723_v2  ;;  %667 = vset.pattern.permute.xlu0 %v723_v2  ;;  %v765_v3 = vld [vmem:[%s1171_s1 + $0x18] sm:$0xff] }
   0x2   :  { %45 = vperm.xlu1 %668, %v753_v0   ;;  %35 = vperm.xlu0 %667, %v758_v1   ;;  %v770_v4 = vld [vmem:[%s1171_s1 + $0x8] sm:$0xff] }
   0x3   :  { %9 = vsyncpa [#allocation4], 0  ;;  %v777_v5 = vld [vmem:[%s1171_s1 + $0x28] sm:$0xff]  ;;  %v782_v6 = vld [vmem:[%s1171_s1 + $0x20] sm:$0xff]  ;;  %v724_v17 = vmov 1   ;;  %v725_v18 = vmov 2   ;;  %v113_v32 = vlaneseq }
   0x4   :  { %v789_v7 = vld [vmem:[%s1171_s1 + $0x38] sm:$0xff]  ;;  %v794_v8 = vld [vmem:[%s1171_s1 + $0x30] sm:$0xff]  ;;  %v801_v9 = vld [vmem:[%s1171_s1 + $0x48] sm:$0xff]  ;;  %v726_v19 = vmov 5   ;;  %v727_v20 = vmov 3   ;;  %v728_v22 = vmov 4  }
   0x5   :  { %v806_v10 = vld [vmem:[%s1171_s1 + $0x40] sm:$0xff]  ;;  %v813_v11 = vld [vmem:[%s1171_s1 + $0x58] sm:$0xff]  ;;  %v818_v12 = vld [vmem:[%s1171_s1 + $0x50] sm:$0xff]  ;;  %v920_v35 = vshrl.u32 %v113_v32, 7  ;;  %s729_s19 = smov [#allocation3]  }
   0x6   :  { %50 = vperm.xlu1 %668, %v765_v3   ;;  %40 = vperm.xlu0 %667, %v770_v4   ;;  %v825_v13 = vld [vmem:[%s1171_s1 + $0x68] sm:$0xff]  ;;  %v830_v14 = vld [vmem:[%s1171_s1 + $0x60] sm:$0xff]  ;;  %v837_v15 = vld [vmem:[%s1171_s1 + $0x78] sm:$0xff]  ;;  %s652_s20 = sshll.u32 %s729_s19, 4  ;;  %s653_s20 = int_to_ptr.vmem [resolvable:$true] %s652_s20 }
   0x7   :  { %v842_v16 = vld [vmem:[%s1171_s1 + $0x70] sm:$0xff]  ;;  %v115_v38 = vsub.s32 0, %v920_v35  ;;  %v199_v39 = vsub.s32 1, %v920_v35  ;;  %v932_v40 = vld [vmem:[%s1170_s0] sm:$0xf]  ;;  %p704_p1 = scmp.lt.s32.totalorder %s653_s20, %s653_s20 }
   0x9   :  { %v939_v43 = vrot.slane %v932_v40, %v115_v38  ;;  %v943_v44 = vrot.slane %v932_v40, %v199_v39  ;;  %v299_v38 = vsub.s32 2, %v920_v35 }
   0xa   :  { %60 = vperm.xlu1 %668, %v777_v5   ;;  %55 = vperm.xlu0 %667, %v782_v6  }
   0xe   :  { %70 = vperm.xlu1 %668, %v789_v7   ;;  %65 = vperm.xlu0 %667, %v794_v8  }
  0x12   :  { %80 = vperm.xlu1 %668, %v801_v9   ;;  %75 = vperm.xlu0 %667, %v806_v10  }
  0x16   :  { %90 = vperm.xlu1 %668, %v813_v11   ;;  %85 = vperm.xlu0 %667, %v818_v12  }
  0x1a   :  { %100 = vperm.xlu1 %668, %v825_v13   ;;  %95 = vperm.xlu0 %667, %v830_v14  }
  0x1e   :  { %110 = vperm.xlu1 %668, %v837_v15   ;;  %105 = vperm.xlu0 %667, %v842_v16  }
  0x22   :  { %670 = vset.pattern.permute.xlu1 %v724_v17  ;;  %669 = vset.pattern.permute.xlu0 %v724_v17 }
  0x23   :  { %138 = vperm.xlu1 %670, %v770_v4   ;;  %134 = vperm.xlu0 %669, %v758_v1  }
  0x27   :  { %142 = vperm.xlu1 %670, %v753_v0   ;;  %146 = vperm.xlu0 %669, %v765_v3  }
  0x2b   :  { %150 = vperm.xlu1 %670, %v782_v6   ;;  %154 = vperm.xlu0 %669, %v777_v5  }
  0x2f   :  { %158 = vperm.xlu1 %670, %v794_v8   ;;  %162 = vperm.xlu0 %669, %v789_v7  }
  0x33   :  { %166 = vperm.xlu1 %670, %v806_v10   ;;  %170 = vperm.xlu0 %669, %v801_v9  }
  0x37   :  { %174 = vperm.xlu1 %670, %v818_v12   ;;  %178 = vperm.xlu0 %669, %v813_v11  }
  0x3b   :  { %182 = vperm.xlu1 %670, %v830_v14   ;;  %186 = vperm.xlu0 %669, %v825_v13  }
  0x3f   :  { %190 = vperm.xlu1 %670, %v842_v16   ;;  %194 = vperm.xlu0 %669, %v837_v15  }
  0x43   :  { %671 = vset.pattern.permute.xlu1 %v725_v18  ;;  %672 = vset.pattern.permute.xlu0 %v725_v18 }
  0x44   :  { %234 = vperm.xlu1 %671, %v758_v1   ;;  %238 = vperm.xlu0 %672, %v770_v4  }
  0x48   :  { %242 = vperm.xlu1 %671, %v753_v0   ;;  %250 = vperm.xlu0 %672, %v782_v6  }
  0x4c   :  { %246 = vperm.xlu1 %671, %v765_v3   ;;  %258 = vperm.xlu0 %672, %v794_v8  }
  0x50   :  { %254 = vperm.xlu1 %671, %v777_v5   ;;  %266 = vperm.xlu0 %672, %v806_v10  }
  0x54   :  { %262 = vperm.xlu1 %671, %v789_v7   ;;  %274 = vperm.xlu0 %672, %v818_v12  }
  0x58   :  { %270 = vperm.xlu1 %671, %v801_v9   ;;  %282 = vperm.xlu0 %672, %v830_v14  }
  0x5c   :  { %278 = vperm.xlu1 %671, %v813_v11   ;;  %290 = vperm.xlu0 %672, %v842_v16  }
  0x60   :  { %286 = vperm.xlu1 %671, %v825_v13   ;;  %676 = vset.pattern.permute.xlu0 %v726_v19 }
  0x61   :  { %534 = vperm.xlu0 %676, %v770_v4  }
  0x64   :  { %294 = vperm.xlu1 %671, %v837_v15  }
  0x65   :  { %546 = vperm.xlu0 %676, %v782_v6  }
  0x68   :  { %673 = vset.pattern.permute.xlu1 %v727_v20 }
  0x69   :  { %338 = vperm.xlu1 %673, %v770_v4   ;;  %680 = vset.pattern.permute.xlu0 %v727_v20 }
  0x6a   :  { %334 = vperm.xlu0 %680, %v758_v1  }
  0x6d   :  { %342 = vperm.xlu1 %673, %v753_v0  }
  0x6e   :  { %346 = vperm.xlu0 %680, %v765_v3  }
  0x71   :  { %350 = vperm.xlu1 %673, %v782_v6  }
  0x72   :  { %354 = vperm.xlu0 %680, %v777_v5  }
  0x75   :  { %358 = vperm.xlu1 %673, %v794_v8  }
  0x76   :  { %362 = vperm.xlu0 %680, %v789_v7  }
  0x79   :  { %366 = vperm.xlu1 %673, %v806_v10  }
  0x7a   :  { %370 = vperm.xlu0 %680, %v801_v9  }
  0x7d   :  { %374 = vperm.xlu1 %673, %v818_v12  }
  0x7e   :  { %382 = vperm.xlu0 %680, %v830_v14  }
  0x81   :  { %v895_v21 = vpop.permute.xlu1 %45  ;;  %674 = vset.pattern.permute.xlu1 %v728_v22  ;;  %v36_v23 = vpop.permute.xlu0 %35 }
  0x82   :  { %438 = vperm.xlu1 %674, %v770_v4   ;;  %386 = vperm.xlu0 %680, %v825_v13   ;;  %v117_v45 = vmul.f32 %v939_v43, %v36_v23 }
  0x85   :  { %v900_v24 = vpop.permute.xlu1 %50  ;;  %v41_v25 = vpop.permute.xlu0 %40 }
  0x86   :  { %442 = vperm.xlu1 %674, %v753_v0   ;;  %686 = vset.pattern.permute.xlu0 %v728_v22  ;;  %v118_v46 = vmul.f32 %v939_v43, %v41_v25 }
  0x87   :  { %434 = vperm.xlu0 %686, %v758_v1  }
  0x89   :  { %v905_v26 = vpop.permute.xlu1 %60  ;;  %v56_v27 = vpop.permute.xlu0 %55 }
  0x8a   :  { %675 = vset.pattern.permute.xlu1 %v726_v19  ;;  %v121_v55 = vmul.f32 %v939_v43, %v56_v27 }
  0x8b   :  { %530 = vperm.xlu1 %675, %v758_v1   ;;  %446 = vperm.xlu0 %686, %v765_v3  }
  0x8d   :  { %v910_v28 = vpop.permute.xlu1 %70  ;;  %v66_v29 = vpop.permute.xlu0 %65 }
  0x8e   :  { %v123_v59 = vmul.f32 %v939_v43, %v66_v29 }
  0x8f   :  { %677 = vset.pattern.permute.xlu1 %v728_v22  ;;  %454 = vperm.xlu0 %686, %v777_v5  }
  0x90   :  { %450 = vperm.xlu1 %677, %v782_v6  }
  0x91   :  { %v915_v30 = vpop.permute.xlu1 %80  ;;  %v76_v31 = vpop.permute.xlu0 %75 }
  0x93   :  { %466 = vperm.xlu0 %686, %v806_v10  }
  0x94   :  { %678 = vset.pattern.permute.xlu1 %v726_v19 }
  0x95   :  { %v91_v33 = vpop.permute.xlu1 %90  ;;  %538 = vperm.xlu1 %678, %v753_v0   ;;  %v86_v34 = vpop.permute.xlu0 %85  ;;  %v125_v0 = vmul.f32 %v939_v43, %v76_v31 }
  0x96   :  { %v128_v17 = vmul.f32 %v939_v43, %v91_v33 }
  0x97   :  { %470 = vperm.xlu0 %686, %v801_v9  }
  0x99   :  { %v923_v36 = vpop.permute.xlu1 %100  ;;  %542 = vperm.xlu1 %678, %v765_v3   ;;  %v96_v37 = vpop.permute.xlu0 %95 }
  0x9a   :  { %v129_v25 = vmul.f32 %v939_v43, %v96_v37  ;;  %v130_v32 = vmul.f32 %v939_v43, %v923_v36 }
  0x9b   :  { %486 = vperm.xlu0 %686, %v825_v13  }
  0x9d   :  { %v934_v41 = vpop.permute.xlu1 %110  ;;  %679 = vset.pattern.permute.xlu1 %v728_v22  ;;  %v106_v42 = vpop.permute.xlu0 %105 }
  0x9e   :  { %458 = vperm.xlu1 %679, %v794_v8   ;;  %v131_v37 = vmul.f32 %v939_v43, %v106_v42 }
  0x9f   :  { %691 = vset.pattern.permute.xlu0 %v726_v19 }
  0xa0   :  { %566 = vperm.xlu0 %691, %v801_v9  }
  0xa2   :  { %v139_v47 = vpop.permute.xlu1 %138  ;;  %462 = vperm.xlu1 %679, %v789_v7   ;;  %v135_v48 = vpop.permute.xlu0 %134 }
  0xa3   :  { %v202_v49 = vmul.f32 %v943_v44, %v139_v47  ;;  %v201_v50 = vmul.f32 %v943_v44, %v135_v48  ;;  %v132_v47 = vmul.f32 %v939_v43, %v934_v41 }
  0xa4   :  { %570 = vperm.xlu0 %691, %v818_v12  }
  0xa5   :  { %v952_v51 = vadd.f32 %v202_v49, %v118_v46  ;;  %v954_v52 = vadd.f32 %v201_v50, %v117_v45  ;;  %v1013_v49 = vrot.slane %v932_v40, %v299_v38 }
  0xa6   :  { %v143_v53 = vpop.permute.xlu1 %142  ;;  %681 = vset.pattern.permute.xlu1 %v726_v19  ;;  %v957_v54 = vpop.permute.xlu0 %146 }
  0xa7   :  { %550 = vperm.xlu1 %681, %v777_v5   ;;  %v127_v5 = vmul.f32 %v939_v43, %v86_v34 }
  0xa8   :  { %578 = vperm.xlu0 %691, %v830_v14  }
  0xaa   :  { %v151_v56 = vpop.permute.xlu1 %150  ;;  %v962_v57 = vpop.permute.xlu0 %154 }
  0xab   :  { %v205_v58 = vmul.f32 %v943_v44, %v151_v56  ;;  %554 = vperm.xlu1 %681, %v794_v8  }
  0xac   :  { %586 = vperm.xlu0 %691, %v842_v16  }
  0xad   :  { %v968_v60 = vadd.f32 %v205_v58, %v121_v55  ;;  %v203_v58 = vmul.f32 %v943_v44, %v143_v53  ;;  %v204_v53 = vmul.f32 %v943_v44, %v957_v54  ;;  %v206_v54 = vmul.f32 %v943_v44, %v962_v57 }
  0xae   :  { %v159_v61 = vpop.permute.xlu1 %158  ;;  %v970_v62 = vpop.permute.xlu0 %162 }
  0xaf   :  { %v207_v63 = vmul.f32 %v943_v44, %v159_v61  ;;  %682 = vset.pattern.permute.xlu1 %v727_v20  ;;  %v208_v57 = vmul.f32 %v943_v44, %v970_v62 }
  0xb0   :  { %378 = vperm.xlu1 %682, %v813_v11  }
  0xb1   :  { %v976_v1 = vadd.f32 %v207_v63, %v123_v59 }
  0xb2   :  { %v167_v2 = vpop.permute.xlu1 %166  ;;  %v978_v3 = vpop.permute.xlu0 %170 }
  0xb3   :  { %v209_v4 = vmul.f32 %v943_v44, %v167_v2  ;;  %v210_v62 = vmul.f32 %v943_v44, %v978_v3 }
  0xb4   :  { %683 = vset.pattern.permute.xlu1 %v726_v19 }
  0xb5   :  { %v983_v6 = vadd.f32 %v209_v4, %v125_v0  ;;  %558 = vperm.xlu1 %683, %v789_v7  }
  0xb6   :  { %v175_v8 = vpop.permute.xlu1 %174  ;;  %v179_v9 = vpop.permute.xlu0 %178 }
  0xb7   :  { %v211_v18 = vmul.f32 %v943_v44, %v175_v8  ;;  %v212_v23 = vmul.f32 %v943_v44, %v179_v9 }
  0xb9   :  { %v990_v27 = vadd.f32 %v211_v18, %v127_v5  ;;  %v992_v29 = vadd.f32 %v212_v23, %v128_v17  ;;  %684 = vset.pattern.permute.xlu1 %v728_v22 }
  0xba   :  { %v183_v31 = vpop.permute.xlu1 %182  ;;  %474 = vperm.xlu1 %684, %v818_v12   ;;  %v187_v7 = vpop.permute.xlu0 %186 }
  0xbb   :  { %v213_v33 = vmul.f32 %v943_v44, %v183_v31  ;;  %v214_v34 = vmul.f32 %v943_v44, %v187_v7 }
  0xbd   :  { %v1002_v39 = vadd.f32 %v213_v33, %v129_v25  ;;  %v1004_v45 = vadd.f32 %v214_v34, %v130_v32 }
  0xbe   :  { %v191_v46 = vpop.permute.xlu1 %190  ;;  %685 = vset.pattern.permute.xlu1 %v726_v19  ;;  %v195_v12 = vpop.permute.xlu0 %194 }
  0xbf   :  { %v215_v36 = vmul.f32 %v943_v44, %v191_v46  ;;  %v216_v48 = vmul.f32 %v943_v44, %v195_v12  ;;  %562 = vperm.xlu1 %685, %v806_v10   ;;  %v119_v10 = vmul.f32 %v939_v43, %v895_v21  ;;  %v120_v21 = vmul.f32 %v939_v43, %v900_v24 }
  0xc0   :  { %v122_v24 = vmul.f32 %v939_v43, %v905_v26  ;;  %v124_v26 = vmul.f32 %v939_v43, %v910_v28  ;;  %v126_v28 = vmul.f32 %v939_v43, %v915_v30 }
  0xc1   :  { %v1015_v42 = vadd.f32 %v215_v36, %v131_v37  ;;  %v1017_v50 = vadd.f32 %v216_v48, %v132_v47  ;;  %v219_v4 = vadd.f32 %v203_v58, %v119_v10  ;;  %v220_v18 = vadd.f32 %v204_v53, %v120_v21 }
  0xc2   :  { %v222_v33 = vadd.f32 %v206_v54, %v122_v24  ;;  %v224_v12 = vadd.f32 %v208_v57, %v124_v26 }
  0xc3   :  { %687 = vset.pattern.permute.xlu1 %v728_v22  ;;  %v235_v55 = vpop.permute.xlu1 %234  ;;  %v239_v56 = vpop.permute.xlu0 %238 }
  0xc4   :  { %v301_v41 = vmul.f32 %v1013_v49, %v235_v55  ;;  %v302_v59 = vmul.f32 %v1013_v49, %v239_v56  ;;  %478 = vperm.xlu1 %687, %v813_v11   ;;  %v226_v56 = vadd.f32 %v210_v62, %v126_v28 }
  0xc6   :  { %v1027_v61 = vadd.f32 %v301_v41, %v954_v52  ;;  %v1030_v63 = vadd.f32 %v302_v59, %v952_v51 }
  0xc7   :  { %v243_v0 = vpop.permute.xlu1 %242  ;;  %v251_v2 = vpop.permute.xlu0 %250 }
  0xc8   :  { %v303_v5 = vmul.f32 %v1013_v49, %v243_v0  ;;  %v305_v8 = vmul.f32 %v1013_v49, %v251_v2  ;;  %688 = vset.pattern.permute.xlu1 %v727_v20 }
  0xc9   :  { %390 = vperm.xlu1 %688, %v842_v16  }
  0xca   :  { %v1040_v52 = vadd.f32 %v303_v5, %v219_v4  ;;  %v1043_v51 = vadd.f32 %v305_v8, %v968_v60  ;;  %v399_v4 = vsub.s32 3, %v920_v35 }
  0xcb   :  { %v247_v9 = vpop.permute.xlu1 %246  ;;  %v259_v17 = vpop.permute.xlu0 %258 }
  0xcc   :  { %v304_v23 = vmul.f32 %v1013_v49, %v247_v9  ;;  %v307_v25 = vmul.f32 %v1013_v49, %v259_v17 }
  0xcd   :  { %689 = vset.pattern.permute.xlu1 %v728_v22 }
  0xce   :  { %v1052_v31 = vadd.f32 %v304_v23, %v220_v18  ;;  %v1055_v60 = vadd.f32 %v307_v25, %v976_v1  ;;  %482 = vperm.xlu1 %689, %v830_v14  }
  0xcf   :  { %v255_v7 = vpop.permute.xlu1 %254  ;;  %v267_v32 = vpop.permute.xlu0 %266 }
  0xd0   :  { %v306_v34 = vmul.f32 %v1013_v49, %v255_v7  ;;  %v309_v38 = vmul.f32 %v1013_v49, %v267_v32 }
  0xd2   :  { %v1064_v37 = vadd.f32 %v306_v34, %v222_v33  ;;  %v325_v1 = vadd.f32 %v309_v38, %v983_v6  ;;  %690 = vset.pattern.permute.xlu1 %v727_v20 }
  0xd3   :  { %394 = vperm.xlu1 %690, %v837_v15   ;;  %v263_v14 = vpop.permute.xlu1 %262  ;;  %v275_v46 = vpop.permute.xlu0 %274 }
  0xd4   :  { %v308_v47 = vmul.f32 %v1013_v49, %v263_v14  ;;  %v311_v36 = vmul.f32 %v1013_v49, %v275_v46 }
  0xd6   :  { %v1075_v48 = vadd.f32 %v308_v47, %v224_v12  ;;  %v327_v6 = vadd.f32 %v311_v36, %v990_v27 }
  0xd7   :  { %692 = vset.pattern.permute.xlu1 %v726_v19  ;;  %v271_v20 = vpop.permute.xlu1 %270  ;;  %v283_v55 = vpop.permute.xlu0 %282 }
  0xd8   :  { %v310_v58 = vmul.f32 %v1013_v49, %v271_v20  ;;  %v313_v44 = vmul.f32 %v1013_v49, %v283_v55  ;;  %574 = vperm.xlu1 %692, %v813_v11  }
  0xda   :  { %v1082_v3 = vadd.f32 %v310_v58, %v226_v56  ;;  %v1085_v41 = vadd.f32 %v313_v44, %v1002_v39 }
  0xdb   :  { %v279_v30 = vpop.permute.xlu1 %278  ;;  %v291_v43 = vpop.permute.xlu0 %290 }
  0xdc   :  { %v312_v27 = vmul.f32 %v1013_v49, %v279_v30  ;;  %v315_v59 = vmul.f32 %v1013_v49, %v291_v43  ;;  %693 = vset.pattern.permute.xlu1 %v728_v22 }
  0xdd   :  { %490 = vperm.xlu1 %693, %v842_v16  }
  0xde   :  { %v1092_v10 = vadd.f32 %v312_v27, %v992_v29  ;;  %v1095_v11 = vadd.f32 %v315_v59, %v1015_v42  ;;  %v1106_v29 = vrot.slane %v932_v40, %v399_v4 }
  0xdf   :  { %v287_v0 = vpop.permute.xlu1 %286 }
  0xe0   :  { %v314_v39 = vmul.f32 %v1013_v49, %v287_v0  ;;  %v535_v2 = vpop.permute.xlu0 %534 }
  0xe1   :  { %494 = vperm.xlu1 %693, %v837_v15  }
  0xe2   :  { %v1101_v53 = vadd.f32 %v314_v39, %v1004_v45 }
  0xe3   :  { %v295_v22 = vpop.permute.xlu1 %294 }
  0xe4   :  { %v316_v16 = vmul.f32 %v1013_v49, %v295_v22  ;;  %v547_v5 = vpop.permute.xlu0 %546 }
  0xe5   :  { %694 = vset.pattern.permute.xlu1 %v726_v19 }
  0xe6   :  { %v1109_v42 = vadd.f32 %v316_v16, %v1017_v50  ;;  %582 = vperm.xlu1 %694, %v825_v13  }
  0xe8   :  { %v339_v8 = vpop.permute.xlu1 %338 }
  0xe9   :  { %v402_v35 = vmul.f32 %v1106_v29, %v339_v8  ;;  %v335_v21 = vpop.permute.xlu0 %334 }
  0xea   :  { %590 = vperm.xlu1 %694, %v837_v15  }
  0xeb   :  { %v418_v45 = vadd.f32 %v402_v35, %v1030_v63 }
  0xec   :  { %v343_v49 = vpop.permute.xlu1 %342 }
  0xed   :  { %v403_v9 = vmul.f32 %v1106_v29, %v343_v49  ;;  %v347_v19 = vpop.permute.xlu0 %346 }
  0xee   :  { %v404_v55 = vmul.f32 %v1106_v29, %v347_v19 }
  0xef   :  { %v419_v40 = vadd.f32 %v403_v9, %v1040_v52 }
  0xf0   :  { %v351_v17 = vpop.permute.xlu1 %350  ;;  %v420_v30 = vadd.f32 %v404_v55, %v1052_v31 }
  0xf1   :  { %v405_v50 = vmul.f32 %v1106_v29, %v351_v17  ;;  %v355_v18 = vpop.permute.xlu0 %354 }
  0xf3   :  { %v421_v13 = vadd.f32 %v405_v50, %v1043_v51  ;;  %v401_v51 = vmul.f32 %v1106_v29, %v335_v21 }
  0xf4   :  { %v359_v54 = vpop.permute.xlu1 %358 }
  0xf5   :  { %v407_v23 = vmul.f32 %v1106_v29, %v359_v54  ;;  %v363_v25 = vpop.permute.xlu0 %362  ;;  %v417_v46 = vadd.f32 %v401_v51, %v1027_v61 }
  0xf7   :  { %v423_v15 = vadd.f32 %v407_v23, %v1055_v60  ;;  %v408_v23 = vmul.f32 %v1106_v29, %v363_v25 }
  0xf8   :  { %v367_v24 = vpop.permute.xlu1 %366 }
  0xf9   :  { %v409_v63 = vmul.f32 %v1106_v29, %v367_v24  ;;  %v371_v7 = vpop.permute.xlu0 %370 }
  0xfb   :  { %v1122_v32 = vadd.f32 %v409_v63, %v325_v1 }
  0xfc   :  { %v375_v33 = vpop.permute.xlu1 %374 }
  0xfd   :  { %v411_v52 = vmul.f32 %v1106_v29, %v375_v33  ;;  %v1125_v57 = vpop.permute.xlu0 %382 }
  0xff   :  { %v1127_v34 = vadd.f32 %v411_v52, %v327_v6 }
 0x101   :  { %v439_v38 = vpop.permute.xlu1 %438  ;;  %v1130_v26 = vpop.permute.xlu0 %386 }
 0x102   :  { %v498_v14 = vadd.f32 %v439_v38, %v418_v45 }
 0x104   :  { %v514_v62 = vmax.f32 %v498_v14, 0.0 }
 0x105   :  { %v443_v60 = vpop.permute.xlu1 %442 }
 0x106   :  { %v435_v12 = vpop.permute.xlu0 %434  ;;  %v594_v28 = vmul.f32 %v535_v2, %v514_v62  ;;  %v499_v56 = vadd.f32 %v443_v60, %v419_v40  ;;  %v406_v2 = vmul.f32 %v1106_v29, %v355_v18 }
 0x107   :  { %v497_v1 = vadd.f32 %v435_v12, %v417_v46  ;;  %v410_v12 = vmul.f32 %v1106_v29, %v371_v7 }
 0x108   :  { %v515_v43 = vmax.f32 %v499_v56, 0.0  ;;  %v422_v19 = vadd.f32 %v406_v2, %v1064_v37 }
 0x109   :  { %v513_v47 = vmax.f32 %v497_v1, 0.0 }
 0x10a   :  { %v531_v36 = vpop.permute.xlu1 %530  ;;  %v447_v44 = vpop.permute.xlu0 %446 }
 0x10b   :  { %v593_v20 = vmul.f32 %v531_v36, %v513_v47  ;;  %v500_v27 = vadd.f32 %v447_v44, %v420_v30  ;;  %v426_v47 = vadd.f32 %v410_v12, %v1082_v3  ;;  %v413_v3 = vmul.f32 %v1106_v29, %v1125_v57 }
 0x10d   :  { %v609_v6 = vadd.f32 %v594_v28, %v593_v20  ;;  %v516_v39 = vmax.f32 %v500_v27, 0.0 }
 0x10e   :  { %v455_v9 = vpop.permute.xlu0 %454 }
 0x10f   :  { %v451_v58 = vpop.permute.xlu1 %450  ;;  %v502_v31 = vadd.f32 %v455_v9, %v422_v19  ;;  %v414_v19 = vmul.f32 %v1106_v29, %v1130_v26 }
 0x110   :  { %v501_v59 = vadd.f32 %v451_v58, %v421_v13 }
 0x111   :  { %v518_v17 = vmax.f32 %v502_v31, 0.0 }
 0x112   :  { %v517_v4 = vmax.f32 %v501_v59, 0.0  ;;  %v467_v33 = vpop.permute.xlu0 %466 }
 0x113   :  { %v505_v25 = vadd.f32 %v467_v33, %v1122_v32 }
 0x114   :  { %v539_v0 = vpop.permute.xlu1 %538  ;;  %v597_v35 = vmul.f32 %v547_v5, %v517_v4  ;;  %v424_v5 = vadd.f32 %v408_v23, %v1075_v48 }
 0x115   :  { %v595_v61 = vmul.f32 %v539_v0, %v515_v43  ;;  %v521_v55 = vmax.f32 %v505_v25, 0.0 }
 0x116   :  { %v471_v60 = vpop.permute.xlu0 %470 }
 0x117   :  { %v610_v22 = vadd.f32 %v609_v6, %v595_v61  ;;  %v506_v28 = vadd.f32 %v471_v60, %v426_v47 }
 0x118   :  { %v543_v16 = vpop.permute.xlu1 %542 }
 0x119   :  { %v596_v8 = vmul.f32 %v543_v16, %v516_v39  ;;  %v522_v56 = vmax.f32 %v506_v28, 0.0 }
 0x11a   :  { %v487_v62 = vpop.permute.xlu0 %486 }
 0x11b   :  { %v611_v21 = vadd.f32 %v610_v22, %v596_v8  ;;  %v429_v22 = vadd.f32 %v413_v3, %v1085_v41 }
 0x11d   :  { %v459_v45 = vpop.permute.xlu1 %458  ;;  %v612_v49 = vadd.f32 %v611_v21, %v597_v35 }
 0x11e   :  { %v503_v50 = vadd.f32 %v459_v45, %v423_v15 }
 0x11f   :  { %v567_v48 = vpop.permute.xlu0 %566 }
 0x120   :  { %v519_v24 = vmax.f32 %v503_v50, 0.0  ;;  %v602_v43 = vmul.f32 %v567_v48, %v522_v56 }
 0x121   :  { %v463_v40 = vpop.permute.xlu1 %462 }
 0x122   :  { %v504_v38 = vadd.f32 %v463_v40, %v424_v5 }
 0x123   :  { %v571_v30 = vpop.permute.xlu0 %570 }
 0x124   :  { %v520_v37 = vmax.f32 %v504_v38, 0.0 }
 0x126   :  { %v551_v13 = vpop.permute.xlu1 %550 }
 0x127   :  { %v598_v54 = vmul.f32 %v551_v13, %v518_v17  ;;  %v579_v45 = vpop.permute.xlu0 %578 }
 0x129   :  { %v613_v63 = vadd.f32 %v612_v49, %v598_v54 }
 0x12a   :  { %v555_v52 = vpop.permute.xlu1 %554 }
 0x12b   :  { %v599_v18 = vmul.f32 %v555_v52, %v519_v24 }
 0x12d   :  { %v614_v51 = vadd.f32 %v613_v63, %v599_v18 }
 0x12f   :  { %v379_v14 = vpop.permute.xlu1 %378 }
 0x130   :  { %v412_v39 = vmul.f32 %v1106_v29, %v379_v14 }
 0x132   :  { %v428_v4 = vadd.f32 %v412_v39, %v1092_v10  ;;  %v430_v10 = vadd.f32 %v414_v19, %v1101_v53 }
 0x134   :  { %v559_v46 = vpop.permute.xlu1 %558  ;;  %v510_v54 = vadd.f32 %v487_v62, %v430_v10 }
 0x135   :  { %v600_v15 = vmul.f32 %v559_v46, %v520_v37 }
 0x136   :  { %v526_v33 = vmax.f32 %v510_v54, 0.0 }
 0x137   :  { %v615_v1 = vadd.f32 %v614_v51, %v600_v15  ;;  %v587_v51 = vpop.permute.xlu0 %586 }
 0x139   :  { %v475_v36 = vpop.permute.xlu1 %474 }
 0x13a   :  { %v507_v20 = vadd.f32 %v475_v36, %v1127_v34 }
 0x13c   :  { %v523_v58 = vmax.f32 %v507_v20, 0.0 }
 0x13e   :  { %v563_v6 = vpop.permute.xlu1 %562  ;;  %v603_v27 = vmul.f32 %v571_v30, %v523_v58 }
 0x13f   :  { %v601_v44 = vmul.f32 %v563_v6, %v521_v55 }
 0x141   :  { %v616_v7 = vadd.f32 %v615_v1, %v601_v44 }
 0x143   :  { %v617_v59 = vadd.f32 %v616_v7, %v602_v43  ;;  %v479_v0 = vpop.permute.xlu1 %478 }
 0x144   :  { %v508_v16 = vadd.f32 %v479_v0, %v428_v4 }
 0x145   :  { %v618_v61 = vadd.f32 %v617_v59, %v603_v27 }
 0x146   :  { %v524_v35 = vmax.f32 %v508_v16, 0.0 }
 0x148   :  { %v391_v32 = vpop.permute.xlu1 %390 }
 0x149   :  { %v415_v57 = vmul.f32 %v1106_v29, %v391_v32 }
 0x14b   :  { %v431_v13 = vadd.f32 %v415_v57, %v1095_v11 }
 0x14d   :  { %v483_v34 = vpop.permute.xlu1 %482 }
 0x14e   :  { %v509_v8 = vadd.f32 %v483_v34, %v429_v22 }
 0x150   :  { %v525_v21 = vmax.f32 %v509_v8, 0.0 }
 0x152   :  { %v395_v2 = vpop.permute.xlu1 %394  ;;  %v605_v31 = vmul.f32 %v579_v45, %v525_v21 }
 0x153   :  { %v416_v41 = vmul.f32 %v1106_v29, %v395_v2 }
 0x155   :  { %v432_v63 = vadd.f32 %v416_v41, %v1109_v42  ;;  %v631_v42 = vstv %s1172_s2  ;;  %s699_s2 = scalar_lea.vmem %s653_s20, 32 }
 0x156   :  { %p700_p0 = scmp.ne.s32.totalorder %s653_s20, %s699_s2  ;;  %p705_p2 = scmp.lt.s32.totalorder %s699_s2, %s699_s2 }
 0x157   :  { %v575_v49 = vpop.permute.xlu1 %574 }
 0x158   :  { %v604_v9 = vmul.f32 %v575_v49, %v524_v35  ;;  %p706_p3 = por %p705_p2, %p704_p1 }
 0x15a   :  { %v619_v40 = vadd.f32 %v618_v61, %v604_v9  ;;  %p707_p4 = pnand %p706_p3, %p700_p0 }
 0x15c   :  { %v491_v17 = vpop.permute.xlu1 %490  ;;  %v620_v50 = vadd.f32 %v619_v40, %v605_v31 }
 0x15d   :  { %v511_v23 = vadd.f32 %v491_v17, %v431_v13 }
 0x15f   :  { %v527_v52 = vmax.f32 %v511_v23, 0.0 }
 0x160   :  { %v495_v24 = vpop.permute.xlu1 %494 }
 0x161   :  { %v512_v26 = vadd.f32 %v495_v24, %v432_v63  ;;  %v607_v38 = vmul.f32 %v587_v51, %v527_v52 }
 0x163   :  { %v528_v14 = vmax.f32 %v512_v26, 0.0 }
 0x165   :  { %v583_v18 = vpop.permute.xlu1 %582 }
 0x166   :  { %v606_v5 = vmul.f32 %v583_v18, %v526_v33 }
 0x168   :  { %v621_v60 = vadd.f32 %v620_v50, %v606_v5 }
 0x169   :  { %v591_v37 = vpop.permute.xlu1 %590 }
 0x16a   :  { %v608_v53 = vmul.f32 %v591_v37, %v528_v14  ;;  %v622_v46 = vadd.f32 %v621_v60, %v607_v38 }
 0x16c   :  { %v623_v29 = vadd.f32 %v622_v46, %v608_v53 }
 0x16e   :  { %v624_v12 = vrot.slane %v623_v29, 4 }
 0x170   :  { %v625_v11 = vadd.f32 %v624_v12, %v623_v29 }
 0x172   :  { %v626_v15 = vrot.slane %v625_v11, 2 }
 0x174   :  { %v627_v62 = vadd.f32 %v626_v15, %v625_v11 }
 0x176   :  { %v628_v1 = vrot.slane %v627_v62, 1 }
 0x178   :  { %v629_v25 = vadd.f32 %v628_v1, %v627_v62 }
 0x17a   :  { %v632_v47 = vadd.f32 %v631_v42, %v629_v25 }
 0x17c   :  { %v633_v36 = vand.u32 2147483647, %v632_v47  ;;  %vm641_vm0 = vcmp.ge.f32.partialorder %v632_v47, 0.0 }
 0x17e   :  { %v634_v28 = vsub.f32 0.0, %v633_v36 }
 0x180   :  { %v635_v20 = vmul.f32 1.442695, %v634_v28 }
 0x182   :  { %695 = vpow2.f32 %v635_v20 }
 0x18c   :  { %v696_v48 = vpop.eup %695 }
 0x18d   :  { %v637_v55 = vadd.f32 1.0, %v696_v48 }
 0x18f   :  { %697 = vrcp.f32 %v637_v55 }
 0x199   :  { %v698_v6 = vpop.eup %697 }
 0x19a   :  { %v640_v56 = vmul.f32 %v698_v6, %v696_v48 }
 0x19c   :  { %v642_v58 = vsel %vm641_vm0, %v640_v56, %v698_v6  ;;  %v644_v44 = vsel %vm641_vm0, %v698_v6, %v640_v56 }
 0x19d   :  { %643 = vst [vmem:[#allocation3] sm:$0x1] %v642_v58  ;;  %645 = vst [vmem:[#allocation3 + $0x1] sm:$0x1] %v644_v44 }
 0x19e   :  { %710 = shalt.err (!%p707_p4)
}
 0x19f   :  { %s711_s23 = scalar_lea.hbm %s1173_s3, 32 }
 0x1a0   :  { %p712_p5 = scmp.ne.s32.totalorder %s1173_s3, %s711_s23  ;;  %p715_p6 = scmp.lt.u32.totalorder %s711_s23, %s1173_s3 }
 0x1a2   :  { %p717_p7 = pnand %p715_p6, %p712_p5 }
 0x1a4   :  { %720 = shalt.err (!%p717_p7)
}
 0x1a5   :  { %655 = dma.vmem_to_hbm [thread:$0]  %s653_s20, 32, %s1173_s3, [#allocation4]  }
 0x1a6   :  { %721 = dma.done.wait [#allocation4], 32  }
 0x1a7   :  { %722 = vsyncadd [#allocation4], 4294967264 }
 0x1a8   :  { %659 = vsyncpa [#allocation4], 1 }

</bundles_post_ra>
